<compile_context>
chip_gen: v7x
topology: tpu7x:2x2x1
jax: 0.10.0
libtpu: 0.0.40
codegen_flags: <defaults>
</compile_context>

<pallas_src>
import jax
import jax.numpy as jnp
from jax.experimental import pallas as pl
from jax.experimental.pallas import tpu as pltpu

_LANE = 128      # lane width / hidden size of fc1/fc2
_SUBLANE = 8
_HIDDEN = 128


def _round_up(n, m):
    return (n + m - 1) // m * m


def _mlp_softmax_kernel(x_ref, w1_ref, b1_ref, w2_ref, b2_ref, w3_ref, b3_ref,
                        o_ref):
    # fc1 + ReLU (MXU accumulates in f32; bias add / ReLU in f32 on the VPU)
    h1 = jnp.dot(x_ref[...], w1_ref[...], preferred_element_type=jnp.float32)
    h1 = jnp.maximum(h1 + b1_ref[...], 0.0)

    # fc2 + ReLU
    h2 = jnp.dot(h1.astype(w2_ref.dtype), w2_ref[...],
                 preferred_element_type=jnp.float32)
    h2 = jnp.maximum(h2 + b2_ref[...], 0.0)

    # fc3 -> logits over the lane-padded class axis (pad cols have bias -1e30)
    logits = jnp.dot(h2.astype(w3_ref.dtype), w3_ref[...],
                     preferred_element_type=jnp.float32)
    logits = logits + b3_ref[...]

    # Numerically-stable softmax over the class axis. Exact reciprocal so each
    # row sums to 1 (the approx EUP reciprocal biased the sum beyond 1e-3).
    m = jnp.max(logits, axis=-1, keepdims=True)
    e = jnp.exp(logits - m)
    denom = jnp.sum(e, axis=-1, keepdims=True)
    o_ref[...] = (e * (1.0 / denom)).astype(o_ref.dtype)


def classifier_b_forward(x, params, *, tb=1024, compute_dtype=jnp.float32):
    """x: (B, input_dim) float32. params: PyTorch-layout weights.

    tb: batch tile (sweep per generation; <=2048 recommended on v7x's 64 MiB
        VMEM, larger OK on v5e/v6e). compute_dtype: jnp.bfloat16 recommended
        for MXU throughput on v5e/v6e/v7x; accumulation stays f32.
    """
    B, F = x.shape
    num_classes = params["w3"].shape[0]
    c_pad = _round_up(max(num_classes, _LANE), _LANE)

    # Pre-transpose PyTorch (out, in) weights to (in, out). Pad fc3 to a
    # lane-dense class axis: zero weight columns, -1e30 bias in the pad slots.
    w1t = params["w1"].T.astype(compute_dtype)
    w2t = params["w2"].T.astype(compute_dtype)
    w3t = jnp.zeros((_HIDDEN, c_pad), compute_dtype)
    w3t = w3t.at[:, :num_classes].set(params["w3"].T.astype(compute_dtype))
    b1 = params["b1"].reshape(1, -1).astype(jnp.float32)
    b2 = params["b2"].reshape(1, -1).astype(jnp.float32)
    b3 = jnp.full((1, c_pad), -1e30, jnp.float32)
    b3 = b3.at[0, :num_classes].set(params["b3"].astype(jnp.float32))

    # Batch tile: multiple of 8 sublanes; pad B so every grid step is full.
    b_pad = _round_up(B, _SUBLANE)
    tb = _round_up(min(tb, b_pad), _SUBLANE)
    b_pad = _round_up(b_pad, tb)

    # Dropout (p=0.2) in eval mode == identity.
    x_in = x.astype(compute_dtype)
    if b_pad != B:
        x_in = jnp.pad(x_in, ((0, b_pad - B), (0, 0)))

    grid = (b_pad // tb,)

    itemsize = jnp.dtype(compute_dtype).itemsize
    cost = pl.CostEstimate(
        flops=2 * b_pad * (F * _HIDDEN + _HIDDEN * _HIDDEN + _HIDDEN * c_pad),
        transcendentals=b_pad * c_pad,
        bytes_accessed=(b_pad * F * itemsize
                        + (F + _HIDDEN) * _HIDDEN * itemsize
                        + _HIDDEN * c_pad * itemsize
                        + (2 * _HIDDEN + c_pad) * 4
                        + b_pad * c_pad * 4),
    )

    out = pl.pallas_call(
        _mlp_softmax_kernel,
        out_shape=jax.ShapeDtypeStruct((b_pad, c_pad), jnp.float32),
        grid=grid,
        in_specs=[
            pl.BlockSpec((tb, F), lambda i: (i, 0)),            # x tile (moves)
            pl.BlockSpec((F, _HIDDEN), lambda i: (0, 0)),       # w1 (resident)
            pl.BlockSpec((1, _HIDDEN), lambda i: (0, 0)),       # b1
            pl.BlockSpec((_HIDDEN, _HIDDEN), lambda i: (0, 0)), # w2
            pl.BlockSpec((1, _HIDDEN), lambda i: (0, 0)),       # b2
            pl.BlockSpec((_HIDDEN, c_pad), lambda i: (0, 0)),   # w3 (padded)
            pl.BlockSpec((1, c_pad), lambda i: (0, 0)),         # b3 (padded)
        ],
        out_specs=pl.BlockSpec((tb, c_pad), lambda i: (i, 0)),
        compiler_params=pltpu.CompilerParams(
            dimension_semantics=("parallel",),
            vmem_limit_bytes=48 * 1024 * 1024,
        ),
        cost_estimate=cost,
    )(x_in, w1t, b1, w2t, b2, w3t, b3)

    # XLA slice in the wrapper (free): drop batch + class padding.
    return out[:B, :num_classes]


def init_params(key, input_dim, num_classes=10):
    """Deterministic init mimicking nn.Linear's default U(-1/sqrt(fan_in), ...)."""
    def linear(k, out_f, in_f):
        kw, kb = jax.random.split(k)
        bound = 1.0 / jnp.sqrt(jnp.float32(in_f))
        w = jax.random.uniform(kw, (out_f, in_f), jnp.float32, -bound, bound)
        b = jax.random.uniform(kb, (out_f,), jnp.float32, -bound, bound)
        return w, b

    k1, k2, k3 = jax.random.split(key, 3)
    w1, b1 = linear(k1, _HIDDEN, input_dim)
    w2, b2 = linear(k2, _HIDDEN, _HIDDEN)
    w3, b3 = linear(k3, num_classes, _HIDDEN)
    return dict(w1=w1, b1=b1, w2=w2, b2=b2, w3=w3, b3=b3)


def _reference(x, p):
    h1 = jnp.maximum(x @ p["w1"].T + p["b1"], 0.0)
    h2 = jnp.maximum(h1 @ p["w2"].T + p["b2"], 0.0)
    logits = h2 @ p["w3"].T + p["b3"]
    return jax.nn.softmax(logits, axis=-1)


if __name__ == "__main__":
    key = jax.random.PRNGKey(0)
    kx, kp = jax.random.split(key)

    # B=10 deliberately exercises the batch-remainder padding path.
    B, input_dim, num_classes = 10, 32, 10
    x = jax.random.normal(kx, (B, input_dim), jnp.float32)
    params = init_params(kp, input_dim, num_classes)
    ref = _reference(x, params)

    # f32-operand path (exact up to f32 rounding).
    out = jax.block_until_ready(classifier_b_forward(x, params))
    assert out.shape == (B, num_classes)
    assert jnp.allclose(out, ref, atol=1e-3, rtol=1e-3)
    assert jnp.allclose(jnp.sum(out, axis=-1), 1.0, atol=1e-3)

    # bf16 MXU-operand path (recommended on v5e/v6e/v7x); f32 accumulation.
    out_bf16 = jax.block_until_ready(
        classifier_b_forward(x, params, compute_dtype=jnp.bfloat16))
    assert out_bf16.shape == (B, num_classes)
    assert jnp.allclose(out_bf16, ref, atol=3e-2, rtol=3e-2)
    assert jnp.allclose(jnp.sum(out_bf16, axis=-1), 1.0, atol=1e-3)

    print("KERNEL_OK")
</pallas_src>

<mosaic_0001>
module attributes {stable_mosaic.version = 11 : i64} {
  func.func @_mlp_softmax_kernel(%arg0: i32, %arg1: memref<16x32xf32, #tpu.memory_space<vmem>>, %arg2: memref<32x128xf32, #tpu.memory_space<vmem>>, %arg3: memref<1x128xf32, #tpu.memory_space<vmem>>, %arg4: memref<128x128xf32, #tpu.memory_space<vmem>>, %arg5: memref<1x128xf32, #tpu.memory_space<vmem>>, %arg6: memref<128x128xf32, #tpu.memory_space<vmem>>, %arg7: memref<1x128xf32, #tpu.memory_space<vmem>>, %arg8: memref<16x128xf32, #tpu.memory_space<vmem>>) attributes {dimension_semantics = [#tpu.dimension_semantics<parallel>], iteration_bounds = array<i64: 1>, scalar_prefetch = 0 : i64, scratch_operands = 0 : i64, tpu.core_type = #tpu.core_type<tc>, window_params = [{transform_indices = @transform_0, window_bounds = array<i64: 16, 32>}, {pipeline_mode = #tpu.pipeline_mode<synchronous>, transform_indices = @transform_1, window_bounds = array<i64: 32, 128>}, {pipeline_mode = #tpu.pipeline_mode<synchronous>, transform_indices = @transform_2, window_bounds = array<i64: 1, 128>}, {pipeline_mode = #tpu.pipeline_mode<synchronous>, transform_indices = @transform_3, window_bounds = array<i64: 128, 128>}, {pipeline_mode = #tpu.pipeline_mode<synchronous>, transform_indices = @transform_4, window_bounds = array<i64: 1, 128>}, {pipeline_mode = #tpu.pipeline_mode<synchronous>, transform_indices = @transform_5, window_bounds = array<i64: 128, 128>}, {pipeline_mode = #tpu.pipeline_mode<synchronous>, transform_indices = @transform_6, window_bounds = array<i64: 1, 128>}, {transform_indices = @transform_7, window_bounds = array<i64: 16, 128>}]} {
    %c0 = arith.constant 0 : index
    %c0_0 = arith.constant 0 : index
    %0 = vector.load %arg1[%c0, %c0_0] : memref<16x32xf32, #tpu.memory_space<vmem>>, vector<16x32xf32>
    %c0_1 = arith.constant 0 : index
    %c0_2 = arith.constant 0 : index
    %1 = vector.load %arg2[%c0_1, %c0_2] : memref<32x128xf32, #tpu.memory_space<vmem>>, vector<32x128xf32>
    %cst = arith.constant dense<0.000000e+00> : vector<16x128xf32>
    %2 = tpu.matmul %0, %1, %cst {dimension_numbers = #tpu.dot_dimension_numbers<[1], [0], [0], [1], [0, 0, 1, 1], [], []>} : vector<16x32xf32>, vector<32x128xf32>, vector<16x128xf32> -> vector<16x128xf32>
    %c0_3 = arith.constant 0 : index
    %c0_4 = arith.constant 0 : index
    %3 = vector.load %arg3[%c0_3, %c0_4] : memref<1x128xf32, #tpu.memory_space<vmem>>, vector<1x128xf32>
    %4 = vector.broadcast %3 : vector<1x128xf32> to vector<16x128xf32>
    %5 = arith.addf %2, %4 : vector<16x128xf32>
    %cst_5 = arith.constant 0.000000e+00 : f32
    %6 = vector.broadcast %cst_5 : f32 to vector<16x128xf32>
    %7 = arith.maximumf %5, %6 : vector<16x128xf32>
    %c0_6 = arith.constant 0 : index
    %c0_7 = arith.constant 0 : index
    %8 = vector.load %arg4[%c0_6, %c0_7] : memref<128x128xf32, #tpu.memory_space<vmem>>, vector<128x128xf32>
    %cst_8 = arith.constant dense<0.000000e+00> : vector<16x128xf32>
    %9 = tpu.matmul %7, %8, %cst_8 {dimension_numbers = #tpu.dot_dimension_numbers<[1], [0], [0], [1], [0, 0, 1, 1], [], []>} : vector<16x128xf32>, vector<128x128xf32>, vector<16x128xf32> -> vector<16x128xf32>
    %c0_9 = arith.constant 0 : index
    %c0_10 = arith.constant 0 : index
    %10 = vector.load %arg5[%c0_9, %c0_10] : memref<1x128xf32, #tpu.memory_space<vmem>>, vector<1x128xf32>
    %11 = vector.broadcast %10 : vector<1x128xf32> to vector<16x128xf32>
    %12 = arith.addf %9, %11 : vector<16x128xf32>
    %cst_11 = arith.constant 0.000000e+00 : f32
    %13 = vector.broadcast %cst_11 : f32 to vector<16x128xf32>
    %14 = arith.maximumf %12, %13 : vector<16x128xf32>
    %c0_12 = arith.constant 0 : index
    %c0_13 = arith.constant 0 : index
    %15 = vector.load %arg6[%c0_12, %c0_13] : memref<128x128xf32, #tpu.memory_space<vmem>>, vector<128x128xf32>
    %cst_14 = arith.constant dense<0.000000e+00> : vector<16x128xf32>
    %16 = tpu.matmul %14, %15, %cst_14 {dimension_numbers = #tpu.dot_dimension_numbers<[1], [0], [0], [1], [0, 0, 1, 1], [], []>} : vector<16x128xf32>, vector<128x128xf32>, vector<16x128xf32> -> vector<16x128xf32>
    %c0_15 = arith.constant 0 : index
    %c0_16 = arith.constant 0 : index
    %17 = vector.load %arg7[%c0_15, %c0_16] : memref<1x128xf32, #tpu.memory_space<vmem>>, vector<1x128xf32>
    %18 = vector.broadcast %17 : vector<1x128xf32> to vector<16x128xf32>
    %19 = arith.addf %16, %18 : vector<16x128xf32>
    %cst_17 = arith.constant dense<0xFF800000> : vector<16xf32>
    %20 = vector.multi_reduction <maximumf>, %19, %cst_17 [1] : vector<16x128xf32> to vector<16xf32>
    %21 = vector.shape_cast %20 : vector<16xf32> to vector<16x1xf32>
    %22 = vector.broadcast %21 : vector<16x1xf32> to vector<16x128xf32>
    %23 = arith.subf %19, %22 : vector<16x128xf32>
    %24 = math.exp %23 : vector<16x128xf32>
    %cst_18 = arith.constant dense<0.000000e+00> : vector<16xf32>
    %25 = vector.multi_reduction <add>, %24, %cst_18 [1] : vector<16x128xf32> to vector<16xf32>
    %26 = vector.shape_cast %25 : vector<16xf32> to vector<16x1xf32>
    %cst_19 = arith.constant 1.000000e+00 : f32
    %27 = vector.broadcast %cst_19 : f32 to vector<16x1xf32>
    %28 = arith.divf %27, %26 : vector<16x1xf32>
    %29 = vector.broadcast %28 : vector<16x1xf32> to vector<16x128xf32>
    %30 = arith.mulf %24, %29 : vector<16x128xf32>
    %c0_20 = arith.constant 0 : index
    %c0_21 = arith.constant 0 : index
    %31 = vector.load %arg8[%c0_20, %c0_21] : memref<16x128xf32, #tpu.memory_space<vmem>>, vector<16x128xf32>
    tpu.vector_store %arg8[%c0_20, %c0_21], %30 {strides = array<i32>} : memref<16x128xf32, #tpu.memory_space<vmem>>, vector<16x128xf32>,
    return
  }
  func.func @transform_0(%arg0: i32) -> (i32, i32) {
    %c0_i32 = arith.constant 0 : i32
    %c0_i32_0 = arith.constant 0 : i32
    return %arg0, %c0_i32 : i32, i32
  }
  func.func @transform_1(%arg0: i32) -> (i32, i32) {
    %c0_i32 = arith.constant 0 : i32
    %c0_i32_0 = arith.constant 0 : i32
    %c0_i32_1 = arith.constant 0 : i32
    return %c0_i32, %c0_i32_0 : i32, i32
  }
  func.func @transform_2(%arg0: i32) -> (i32, i32) {
    %c0_i32 = arith.constant 0 : i32
    %c0_i32_0 = arith.constant 0 : i32
    %c0_i32_1 = arith.constant 0 : i32
    return %c0_i32, %c0_i32_0 : i32, i32
  }
  func.func @transform_3(%arg0: i32) -> (i32, i32) {
    %c0_i32 = arith.constant 0 : i32
    %c0_i32_0 = arith.constant 0 : i32
    %c0_i32_1 = arith.constant 0 : i32
    return %c0_i32, %c0_i32_0 : i32, i32
  }
  func.func @transform_4(%arg0: i32) -> (i32, i32) {
    %c0_i32 = arith.constant 0 : i32
    %c0_i32_0 = arith.constant 0 : i32
    %c0_i32_1 = arith.constant 0 : i32
    return %c0_i32, %c0_i32_0 : i32, i32
  }
  func.func @transform_5(%arg0: i32) -> (i32, i32) {
    %c0_i32 = arith.constant 0 : i32
    %c0_i32_0 = arith.constant 0 : i32
    %c0_i32_1 = arith.constant 0 : i32
    return %c0_i32, %c0_i32_0 : i32, i32
  }
  func.func @transform_6(%arg0: i32) -> (i32, i32) {
    %c0_i32 = arith.constant 0 : i32
    %c0_i32_0 = arith.constant 0 : i32
    %c0_i32_1 = arith.constant 0 : i32
    return %c0_i32, %c0_i32_0 : i32, i32
  }
  func.func @transform_7(%arg0: i32) -> (i32, i32) {
    %c0_i32 = arith.constant 0 : i32
    %c0_i32_0 = arith.constant 0 : i32
    return %arg0, %c0_i32 : i32, i32
  }
}

</mosaic_0001>

<bundles_post_ra>
// kernel: tpu_custom_call.1
= control target key start
LH: loop header
LB: loop body
LE: loop exit
PB: predicated region body
PF: predicated region fallthrough
CT: control target
= control target key end

     0   :  { %12 = vsyncpa [#allocation3], 0  ;;  %s898_s0 = inlined_call_operand.hbm [shape: f32[16,32], index: 0, kind: input, shape index: {}]   ;;  %s899_s1 = inlined_call_operand.hbm [shape: f32[32,128], index: 1, kind: input, shape index: {}]   ;;  %s900_s2 = inlined_call_operand.vmem [shape: f32[1,128], index: 2, kind: input, shape index: {}]   ;;  %s901_s3 = inlined_call_operand.hbm [shape: f32[128,128], index: 3, kind: input, shape index: {}]   ;;  %s902_s4 = inlined_call_operand.vmem [shape: f32[1,128], index: 4, kind: input, shape index: {}]   ;;  %s903_s5 = inlined_call_operand.hbm [shape: f32[128,128], index: 5, kind: input, shape index: {}]   ;;  %s904_s6 = inlined_call_operand.vmem [shape: f32[1,128], index: 6, kind: input, shape index: {}]   ;;  %s905_s7 = inlined_call_operand.hbm [shape: f32[16,128], index: 7, kind: output, shape index: {}]  }
   0x1   :  { %13 = vsyncpa [#allocation6], 0 }
   0x2   :  { %14 = vsyncpa [#allocation9], 0 }
   0x3   :  { %15 = vsyncpa [#allocation4], 0  ;;  %s751_s24 = smov [#allocation5]   ;;  %s752_s26 = smov [#allocation2]  }
   0x4   :  { %s33_s25 = sshll.u32 %s751_s24, 4  ;;  %s21_s27 = sshll.u32 %s752_s26, 4  ;;  %s34_s25 = int_to_ptr.vmem [resolvable:$true] %s33_s25  ;;  %s798_s27 = int_to_ptr.vmem [resolvable:$true] %s21_s27 }
   0x5   :  { %s633_s30 = scalar_lea.hbm %s899_s1, 512 }
   0x6   :  { %p634_p0 = scmp.ne.s32.totalorder %s899_s1, %s633_s30  ;;  %p637_p1 = scmp.lt.u32.totalorder %s633_s30, %s899_s1 }
   0x8   :  { %p639_p2 = pnand %p637_p1, %p634_p0 }
   0xa   :  { %642 = shalt.err (!%p639_p2)
}
   0xb   :  { %s643_s12 = scalar_lea.vmem %s34_s25, 512  ;;  %p648_p4 = scmp.lt.s32.totalorder %s34_s25, %s34_s25 }
   0xc   :  { %p644_p3 = scmp.ne.s32.totalorder %s34_s25, %s643_s12  ;;  %p649_p5 = scmp.lt.s32.totalorder %s643_s12, %s643_s12 }
   0xe   :  { %p650_p6 = por %p649_p5, %p648_p4 }
  0x10   :  { %p651_p7 = pnand %p650_p6, %p644_p3 }
  0x12   :  { %654 = shalt.err (!%p651_p7)
}
  0x13   :  { %s753_s13 = smov 128   ;;  %s754_s14 = smov 8  }
  0x14   :  { %39 = dma.hbm_to_vmem [thread:$0]  %s899_s1, 512, %s34_s25, [#allocation6], %s753_s13, %s753_s13, %s754_s14  }
  0x15   :  { %s655_s19 = scalar_lea.hbm %s898_s0, 256 }
  0x16   :  { %p656_p8 = scmp.ne.s32.totalorder %s898_s0, %s655_s19  ;;  %p659_p9 = scmp.lt.u32.totalorder %s655_s19, %s898_s0 }
  0x18   :  { %p661_p10 = pnand %p659_p9, %p656_p8 }
  0x1a   :  { %664 = shalt.err (!%p661_p10)
}
  0x1b   :  { %s665_s24 = scalar_lea.vmem %s798_s27, 256  ;;  %p670_p12 = scmp.lt.s32.totalorder %s798_s27, %s798_s27 }
  0x1c   :  { %p666_p11 = scmp.ne.s32.totalorder %s798_s27, %s665_s24  ;;  %p671_p13 = scmp.lt.s32.totalorder %s665_s24, %s665_s24 }
  0x1e   :  { %p672_p0 = por %p671_p13, %p670_p12 }
  0x20   :  { %p673_p1 = pnand %p672_p0, %p666_p11 }
  0x22   :  { %676 = shalt.err (!%p673_p1)
}
  0x23   :  { %27 = dma.hbm_to_vmem [thread:$0]  %s898_s0, 256, %s798_s27, [#allocation3], %s753_s13, %s753_s13, %s754_s14  }
  0x24   :  { %s755_s26 = smov [#allocation7]   ;;  %s756_s29 = smov [#allocation8]  }
  0x25   :  { %s47_s28 = sshll.u32 %s755_s26, 4  ;;  %s61_s30 = sshll.u32 %s756_s29, 4  ;;  %s48_s28 = int_to_ptr.vmem [resolvable:$true] %s47_s28  ;;  %s835_s30 = int_to_ptr.vmem [resolvable:$true] %s61_s30 }
  0x26   :  { %s677_s10 = scalar_lea.hbm %s901_s3, 2048 }
  0x27   :  { %p678_p2 = scmp.ne.s32.totalorder %s901_s3, %s677_s10  ;;  %p681_p3 = scmp.lt.u32.totalorder %s677_s10, %s901_s3 }
  0x29   :  { %p683_p4 = pnand %p681_p3, %p678_p2 }
  0x2b   :  { %686 = shalt.err (!%p683_p4)
}
  0x2c   :  { %s687_s0 = scalar_lea.vmem %s48_s28, 2048  ;;  %p692_p6 = scmp.lt.s32.totalorder %s48_s28, %s48_s28 }
  0x2d   :  { %p688_p5 = scmp.ne.s32.totalorder %s48_s28, %s687_s0  ;;  %p693_p7 = scmp.lt.s32.totalorder %s687_s0, %s687_s0 }
  0x2f   :  { %p694_p8 = por %p693_p7, %p692_p6 }
  0x31   :  { %p695_p9 = pnand %p694_p8, %p688_p5 }
  0x33   :  { %698 = shalt.err (!%p695_p9)
}
  0x34   :  { %53 = dma.hbm_to_vmem [thread:$0]  %s901_s3, 2048, %s48_s28, [#allocation6], %s753_s13, %s753_s13, %s754_s14  }
  0x35   :  { %s699_s20 = scalar_lea.hbm %s903_s5, 2048 }
  0x36   :  { %p700_p10 = scmp.ne.s32.totalorder %s903_s5, %s699_s20  ;;  %p703_p11 = scmp.lt.u32.totalorder %s699_s20, %s903_s5 }
  0x38   :  { %p705_p12 = pnand %p703_p11, %p700_p10 }
  0x3a   :  { %708 = shalt.err (!%p705_p12)
}
  0x3b   :  { %s709_s1 = scalar_lea.vmem %s835_s30, 2048  ;;  %p714_p0 = scmp.lt.s32.totalorder %s835_s30, %s835_s30 }
  0x3c   :  { %p710_p13 = scmp.ne.s32.totalorder %s835_s30, %s709_s1  ;;  %p715_p1 = scmp.lt.s32.totalorder %s709_s1, %s709_s1 }
  0x3e   :  { %p716_p2 = por %p715_p1, %p714_p0 }
  0x40   :  { %p717_p3 = pnand %p716_p2, %p710_p13 }
  0x42   :  { %720 = shalt.err (!%p717_p3)
}
  0x43   :  { %67 = dma.hbm_to_vmem [thread:$0]  %s903_s5, 2048, %s835_s30, [#allocation9], %s753_s13, %s753_s13, %s754_s14  }
  0x44   :  { %743 = dma.done.wait [#allocation3], 256  }
  0x45   :  { %744 = vsyncadd [#allocation3], 4294967040 }
  0x46   :  { %745 = dma.done.wait [#allocation6], 2560  }
  0x47   :  { %746 = vsyncadd [#allocation6], 4294964736 }
  0x48   :  { %747 = dma.done.wait [#allocation9], 2048  }
  0x49   :  { %748 = vsyncadd [#allocation9], 4294965248  ;;  %vm95_vm0 = vcmask 261120   ;;  %v84_v0 = vld [vmem:[#allocation5] sm:$0xff]  ;;  %v85_v1 = vld [vmem:[#allocation5 + $0x8] sm:$0xff] }
  0x4a   :  { %v86_v2 = vld [vmem:[#allocation5 + $0x10] sm:$0xff]  ;;  %v546_v3 = vpack.c.bf16 %v85_v1, %v84_v0  ;;  %v87_v4 = vld [vmem:[#allocation5 + $0x18] sm:$0xff]  ;;  %v179_v7 = vld [vmem:[#allocation7] sm:$0xff] }
  0x4b   :  { %v82_v5 = vld [vmem:[#allocation2] sm:$0xff]  ;;  %v550_v6 = vpack.c.bf16 %v87_v4, %v86_v2  ;;  %v180_v8 = vld [vmem:[#allocation7 + $0x8] sm:$0xff]  ;;  %v182_v11 = vld [vmem:[#allocation7 + $0x18] sm:$0xff] }
  0x4c   :  { %473 = vmatprep.mubr.msk.f32.mxu0 %vm95_vm0, %v82_v5  ;;  %v181_v9 = vld [vmem:[#allocation7 + $0x10] sm:$0xff]  ;;  %547 = vmatprep.subr.bf16.mxu0 %v546_v3  ;;  %v554_v10 = vpack.c.bf16 %v180_v8, %v179_v7  ;;  %v183_v13 = vld [vmem:[#allocation7 + $0x20] sm:$0xff]  ;;  %v184_v14 = vld [vmem:[#allocation7 + $0x28] sm:$0xff] }
  0x4d   :  { %549 = vmatpush3.bf16.msra.mxu0 %v546_v3  ;;  %v558_v12 = vpack.c.bf16 %v182_v11, %v181_v9  ;;  %v562_v15 = vpack.c.bf16 %v184_v14, %v183_v13  ;;  %v83_v16 = vld [vmem:[#allocation2 + $0x8] sm:$0xff]  ;;  %v185_v17 = vld [vmem:[#allocation7 + $0x30] sm:$0xff]  ;;  %v187_v20 = vld [vmem:[#allocation7 + $0x40] sm:$0xff] }
  0x4e   :  { %551 = vmatprep.subr.bf16.mxu0 %v550_v6  ;;  %555 = vmatprep.subr.bf16.mxu1 %v554_v10  ;;  %v186_v18 = vld [vmem:[#allocation7 + $0x38] sm:$0xff]  ;;  %v188_v21 = vld [vmem:[#allocation7 + $0x48] sm:$0xff]  ;;  %v189_v23 = vld [vmem:[#allocation7 + $0x50] sm:$0xff] }
  0x4f   :  { %557 = vmatpush3.bf16.msra.mxu1 %v554_v10  ;;  %v566_v19 = vpack.c.bf16 %v186_v18, %v185_v17  ;;  %v570_v22 = vpack.c.bf16 %v188_v21, %v187_v20  ;;  %v190_v24 = vld [vmem:[#allocation7 + $0x58] sm:$0xff]  ;;  %v191_v26 = vld [vmem:[#allocation7 + $0x60] sm:$0xff]  ;;  %v192_v27 = vld [vmem:[#allocation7 + $0x68] sm:$0xff] }
  0x50   :  { %559 = vmatprep.subr.bf16.mxu1 %v558_v12  ;;  %v574_v25 = vpack.c.bf16 %v190_v24, %v189_v23  ;;  %v578_v28 = vpack.c.bf16 %v192_v27, %v191_v26  ;;  %v193_v29 = vld [vmem:[#allocation7 + $0x70] sm:$0xff]  ;;  %v194_v30 = vld [vmem:[#allocation7 + $0x78] sm:$0xff]  ;;  %v279_v32 = vld [vmem:[#allocation8] sm:$0xff] }
  0x51   :  { %553 = vmatpush3.bf16.msra.mxu0 %v550_v6  ;;  %v582_v31 = vpack.c.bf16 %v194_v30, %v193_v29  ;;  %v280_v33 = vld [vmem:[#allocation8 + $0x8] sm:$0xff]  ;;  %v281_v34 = vld [vmem:[#allocation8 + $0x10] sm:$0xff]  ;;  %v282_v36 = vld [vmem:[#allocation8 + $0x18] sm:$0xff] }
  0x52   :  { %v586_v35 = vpack.c.bf16 %v280_v33, %v279_v32  ;;  %v590_v37 = vpack.c.bf16 %v282_v36, %v281_v34  ;;  %v283_v38 = vld [vmem:[#allocation8 + $0x20] sm:$0xff]  ;;  %v284_v39 = vld [vmem:[#allocation8 + $0x28] sm:$0xff]  ;;  %v285_v41 = vld [vmem:[#allocation8 + $0x30] sm:$0xff] }
  0x53   :  { %561 = vmatpush3.bf16.msra.mxu1 %v558_v12  ;;  %v594_v40 = vpack.c.bf16 %v284_v39, %v283_v38  ;;  %v286_v42 = vld [vmem:[#allocation8 + $0x38] sm:$0xff]  ;;  %v287_v44 = vld [vmem:[#allocation8 + $0x40] sm:$0xff]  ;;  %v288_v45 = vld [vmem:[#allocation8 + $0x48] sm:$0xff] }
  0x54   :  { %474 = vmatmul.mubr.msk.f32.vlgmr.msra.gmra.mrb[0].mxu0 %vm95_vm0, %v83_v16  ;;  %563 = vmatprep.subr.bf16.mxu1 %v562_v15  ;;  %v598_v43 = vpack.c.bf16 %v286_v42, %v285_v41  ;;  %v602_v46 = vpack.c.bf16 %v288_v45, %v287_v44  ;;  %v289_v47 = vld [vmem:[#allocation8 + $0x50] sm:$0xff]  ;;  %v290_v48 = vld [vmem:[#allocation8 + $0x58] sm:$0xff]  ;;  %v291_v50 = vld [vmem:[#allocation8 + $0x60] sm:$0xff] }
  0x55   :  { %587 = vmatprep.subr.bf16.mxu0 %v586_v35  ;;  %v606_v49 = vpack.c.bf16 %v290_v48, %v289_v47  ;;  %v292_v51 = vld [vmem:[#allocation8 + $0x68] sm:$0xff]  ;;  %v418_v53 = vld [vmem:[%s900_s2] ss:$0 sm:$0xff]  ;;  %v294_v61 = vld [vmem:[#allocation8 + $0x78] sm:$0xff] }
  0x56   :  { %589 = vmatpush3.bf16.msra.mxu0 %v586_v35  ;;  %v610_v52 = vpack.c.bf16 %v292_v51, %v291_v50  ;;  %v293_v60 = vld [vmem:[#allocation8 + $0x70] sm:$0xff] }
  0x57   :  { %565 = vmatpush3.bf16.msra.mxu1 %v562_v15  ;;  %591 = vmatprep.subr.bf16.mxu0 %v590_v37  ;;  %v614_v62 = vpack.c.bf16 %v294_v61, %v293_v60  ;;  %v421_v63 = vld [vmem:[%s902_s4] ss:$0 sm:$0xff]  ;;  %s757_s4 = smov [#allocation10]  }
  0x58   :  { %567 = vmatprep.subr.bf16.mxu1 %v566_v19  ;;  %v422_v6 = vld [vmem:[%s904_s6] ss:$0 sm:$0xff]  ;;  %s404_s6 = sshll.u32 %s757_s4, 4  ;;  %s405_s6 = int_to_ptr.vmem [resolvable:$true] %s404_s6 }
  0x59   :  { %s721_s8 = scalar_lea.vmem %s405_s6, 256  ;;  %p726_p5 = scmp.lt.s32.totalorder %s405_s6, %s405_s6 }
  0x5a   :  { %593 = vmatpush3.bf16.msra.mxu0 %v590_v37  ;;  %p722_p4 = scmp.ne.s32.totalorder %s405_s6, %s721_s8  ;;  %p727_p6 = scmp.lt.s32.totalorder %s721_s8, %s721_s8 }
  0x5b   :  { %569 = vmatpush3.bf16.msra.mxu1 %v566_v19  ;;  %595 = vmatprep.subr.bf16.mxu0 %v594_v40 }
  0x5c   :  { %571 = vmatprep.subr.bf16.mxu1 %v570_v22  ;;  %p728_p7 = por %p727_p6, %p726_p5 }
  0x5e   :  { %597 = vmatpush3.bf16.msra.mxu0 %v594_v40  ;;  %p729_p8 = pnand %p728_p7, %p722_p4 }
  0x5f   :  { %573 = vmatpush3.bf16.msra.mxu1 %v570_v22  ;;  %599 = vmatprep.subr.bf16.mxu0 %v598_v43 }
  0x60   :  { %575 = vmatprep.subr.bf16.mxu1 %v574_v25 }
  0x62   :  { %601 = vmatpush3.bf16.msra.mxu0 %v598_v43 }
  0x63   :  { %577 = vmatpush3.bf16.msra.mxu1 %v574_v25  ;;  %603 = vmatprep.subr.bf16.mxu0 %v602_v46 }
  0x64   :  { %579 = vmatprep.subr.bf16.mxu1 %v578_v28 }
  0x66   :  { %605 = vmatpush3.bf16.msra.mxu0 %v602_v46 }
  0x67   :  { %581 = vmatpush3.bf16.msra.mxu1 %v578_v28  ;;  %607 = vmatprep.subr.bf16.mxu0 %v606_v49 }
  0x68   :  { %583 = vmatprep.subr.bf16.mxu1 %v582_v31 }
  0x6a   :  { %609 = vmatpush3.bf16.msra.mxu0 %v606_v49 }
  0x6b   :  { %585 = vmatpush3.bf16.msra.mxu1 %v582_v31  ;;  %611 = vmatprep.subr.bf16.mxu0 %v610_v52 }
  0x6e   :  { %613 = vmatpush3.bf16.msra.mxu0 %v610_v52 }
  0x6f   :  { %615 = vmatprep.subr.bf16.mxu0 %v614_v62 }
  0x72   :  { %617 = vmatpush3.bf16.msra.mxu0 %v614_v62 }
 0x127   :  { %v475_v54 = vpop.f32.mrb[0].mxu0 }
 0x128   :  { %v174_v55 = vadd.f32 %v475_v54, %v418_v53  ;;  %v168_v56 = vpop.f32.mrb[1].mxu0 }
 0x129   :  { %v169_v57 = vadd.f32 %v418_v53, %v168_v56 }
 0x12a   :  { %v178_v59 = vmax.f32 %v174_v55, 0.0 }
 0x12b   :  { %v177_v58 = vmax.f32 %v169_v57, 0.0 }
 0x12d   :  { %508 = vmatprep.mubr.f32.mxu1 %v177_v58 }
 0x12e   :  { %509 = vmatmul.mubr.f32.vlgmr.msra.gmra.mrb[0].mxu1 %v178_v59 }
 0x201   :  { %v510_v0 = vpop.f32.mrb[0].mxu1 }
 0x202   :  { %v274_v1 = vadd.f32 %v510_v0, %v421_v63  ;;  %v268_v2 = vpop.f32.mrb[1].mxu1 }
 0x203   :  { %v269_v3 = vadd.f32 %v421_v63, %v268_v2 }
 0x204   :  { %v278_v5 = vmax.f32 %v274_v1, 0.0 }
 0x205   :  { %v277_v4 = vmax.f32 %v269_v3, 0.0 }
 0x207   :  { %543 = vmatprep.mubr.f32.mxu0 %v277_v4 }
 0x208   :  { %544 = vmatmul.mubr.f32.vlgmr.msra.gmra.mrb[2].mxu0 %v278_v5 }
 0x2db   :  { %v545_v7 = vpop.f32.mrb[2].mxu0 }
 0x2dc   :  { %v368_v8 = vpop.f32.mrb[3].mxu0  ;;  %v374_v10 = vadd.f32 %v545_v7, %v422_v6 }
 0x2dd   :  { %v369_v9 = vadd.f32 %v422_v6, %v368_v8 }
 0x2df   :  { %377 = vmax.xlane.f32.xlu0 %v369_v9 }
 0x2e3   :  { %379 = vmax.xlane.f32.xlu0 %v374_v10 }
 0x36c   :  { %v378_v11 = vpop.xlane.xlu0 %377 }
 0x36d   :  { %v381_v12 = vsub.f32 %v369_v9, %v378_v11 }
 0x36f   :  { %v383_v13 = vmul.f32 1.442695, %v381_v12 }
 0x370   :  { %v380_v14 = vpop.xlane.xlu0 %379 }
 0x371   :  { %625 = vpow2.f32 %v383_v13  ;;  %v382_v15 = vsub.f32 %v374_v10, %v380_v14 }
 0x373   :  { %v385_v16 = vmul.f32 1.442695, %v382_v15 }
 0x375   :  { %627 = vpow2.f32 %v385_v16 }
 0x37b   :  { %v626_v17 = vpop.eup %625 }
 0x37c   :  { %387 = vadd.xlane.f32.xlu1 %v626_v17 }
 0x37f   :  { %v628_v18 = vpop.eup %627 }
 0x380   :  { %389 = vadd.xlane.f32.xlu1 %v628_v18 }
 0x409   :  { %v388_v19 = vpop.xlane.xlu1 %387 }
 0x40a   :  { %629 = vrcp.f32 %v388_v19 }
 0x40d   :  { %v390_v20 = vpop.xlane.xlu1 %389 }
 0x40e   :  { %631 = vrcp.f32 %v390_v20 }
 0x414   :  { %v630_v21 = vpop.eup %629 }
 0x415   :  { %v395_v22 = vmul.f32 %v630_v21, %v626_v17 }
 0x417   :  { %397 = vst [vmem:[#allocation10] sm:$0xff] %v395_v22 }
 0x418   :  { %v632_v23 = vpop.eup %631 }
 0x419   :  { %v396_v24 = vmul.f32 %v632_v23, %v628_v18 }
 0x41b   :  { %398 = vst [vmem:[#allocation10 + $0x8] sm:$0xff] %v396_v24 }
 0x41c   :  { %732 = shalt.err (!%p729_p8)
}
 0x41d   :  { %s733_s11 = scalar_lea.hbm %s905_s7, 256 }
 0x41e   :  { %p734_p9 = scmp.ne.s32.totalorder %s905_s7, %s733_s11  ;;  %p737_p10 = scmp.lt.u32.totalorder %s733_s11, %s905_s7 }
 0x420   :  { %p739_p11 = pnand %p737_p10, %p734_p9 }
 0x422   :  { %742 = shalt.err (!%p739_p11)
}
 0x423   :  { %410 = dma.vmem_to_hbm [thread:$0]  %s405_s6, 256, %s905_s7, [#allocation4], %s753_s13, %s753_s13, %s754_s14  }
 0x424   :  { %749 = dma.done.wait [#allocation4], 256  }
 0x425   :  { %750 = vsyncadd [#allocation4], 4294967040 }
 0x426   :  { %414 = vsyncpa [#allocation3], 1 }
 0x427   :  { %415 = vsyncpa [#allocation6], 1 }
 0x428   :  { %416 = vsyncpa [#allocation9], 1 }
 0x429   :  { %417 = vsyncpa [#allocation4], 1 }

</bundles_post_ra>
